<compile_context>
chip_gen: v7x
topology: tpu7x:2x2x1
jax: 0.10.0
libtpu: 0.0.40
codegen_flags: <defaults>
</compile_context>

<pallas_src>
import functools

import jax
import jax.numpy as jnp
import numpy as np
from jax import lax
from jax.experimental import pallas as pl
from jax.experimental.pallas import tpu as pltpu


def _decoder_block_kernel(p_ref, w_ref, scale_ref, shift_ref, o_ref, *, neg_slope):
    """One batch element per grid step.

    p_ref:     (K, HWq)        union-offset im2col patches (K = U_r*U_c*C_in)
    w_ref:     (S2*C_out, K)   per-phase flipped conv-transpose weight rows
    scale_ref: (S2*C_out, 1)   gamma / sqrt(running_var + eps), tiled per phase
    shift_ref: (S2*C_out, 1)   beta - running_mean * scale,     tiled per phase
    o_ref:     (S2*C_out, HWq) lane-dense output slab (de-interleaved in wrapper)
    """
    # Single fused matmul on the MXU; accumulation in f32.
    acc = jnp.dot(w_ref[...], p_ref[...], preferred_element_type=jnp.float32)
    # LeakyReLU(0.1): max(x, 0.1*x) == leaky_relu(x) for 0 < slope < 1.
    acc = jnp.maximum(acc, neg_slope * acc)
    # Dropout(0.2): identity in eval mode.
    # BatchNorm2d (eval): per-channel affine with folded running stats.
    acc = acc * scale_ref[...] + shift_ref[...]
    o_ref[...] = acc.astype(o_ref.dtype)


def decoder_block_forward(x_nchw, wt, gamma, beta, run_mean, run_var,
                          *, stride, padding, eps=1e-5, neg_slope=0.1):
    """Equivalent of DecoderBlock.forward (eval mode). x_nchw: (N, C_in, H, W)."""
    n, c_in, h_in, w_in = x_nchw.shape
    c_in_w, c_out, kh, kw = wt.shape
    assert c_in == c_in_w
    s = stride
    h_out = (h_in - 1) * s - 2 * padding + kh
    w_out = (w_in - 1) * s - 2 * padding + kw
    assert h_out > 0 and w_out > 0
    # Sub-pixel decomposition needs uniform taps / sub-grid sizes per phase.
    # TODO(synk): fall back to a dilated-input path for kernel % stride != 0.
    assert kh % s == 0 and kw % s == 0 and h_out % s == 0 and w_out % s == 0

    ph, pw = kh - 1 - padding, kw - 1 - padding
    s2 = s * s
    hq, wq = h_out // s, w_out // s
    hwq = hq * wq

    # Union of per-phase input row/col offsets (integers; typically kh/s + 1 of them).
    def _offsets(k, pad):
        return sorted({(r + i - pad) // s
                       for r in range(s) for i in range(k)
                       if (r + i - pad) % s == 0})

    dys = _offsets(kh, ph)
    dxs = _offsets(kw, pw)
    u_r, u_c = len(dys), len(dxs)
    k_tot = u_r * u_c * c_in

    # --- wrapper glue (plain JAX/XLA): layout + im2col over union offsets ----
    x = jnp.transpose(x_nchw, (0, 2, 3, 1))                       # NHWC
    pad_t = max(0, -dys[0])
    pad_b = max(0, hq - 1 + dys[-1] - (h_in - 1))
    pad_l = max(0, -dxs[0])
    pad_r = max(0, wq - 1 + dxs[-1] - (w_in - 1))
    x_pad = jnp.pad(x, ((0, 0), (pad_t, pad_b), (pad_l, pad_r), (0, 0)))

    taps = []
    for dy in dys:
        for dx in dxs:
            sl = x_pad[:, pad_t + dy:pad_t + dy + hq,
                          pad_l + dx:pad_l + dx + wq, :]          # (N, Hq, Wq, C_in)
            taps.append(jnp.transpose(sl, (0, 3, 1, 2)).reshape(n, c_in, hwq))
    patches = jnp.stack(taps, axis=1).reshape(n, k_tot, hwq)      # (N, K, HWq)

    # Per-phase weight rows (row index = (ry*s + rx)*C_out + co). Offsets not
    # used by a phase get zero rows so all phases share one patch matrix.
    w_rows = []
    for ry in range(s):
        for rx in range(s):
            blocks = []
            for dy in dys:
                i = dy * s - ry + ph
                for dx in dxs:
                    j = dx * s - rx + pw
                    if 0 <= i < kh and 0 <= j < kw:
                        blocks.append(wt[:, :, kh - 1 - i, kw - 1 - j])   # (C_in, C_out)
                    else:
                        blocks.append(jnp.zeros((c_in, c_out), wt.dtype))
            w_phase = jnp.stack(blocks, axis=0).reshape(k_tot, c_out)     # (K, C_out)
            w_rows.append(w_phase.T)                                      # (C_out, K)
    w_all = jnp.concatenate(w_rows, axis=0)                               # (S2*C_out, K)

    # Fold BatchNorm running stats into per-channel scale/shift (applied after
    # LeakyReLU — cannot be folded into the conv weight), tiled per phase.
    scale = (gamma / jnp.sqrt(run_var + eps)).astype(jnp.float32)
    shift = (beta - run_mean * scale).astype(jnp.float32)
    scale_all = jnp.tile(scale, s2).reshape(s2 * c_out, 1)
    shift_all = jnp.tile(shift, s2).reshape(s2 * c_out, 1)

    kernel = functools.partial(_decoder_block_kernel, neg_slope=neg_slope)

    out = pl.pallas_call(
        kernel,
        out_shape=jax.ShapeDtypeStruct((n, s2 * c_out, hwq), x_nchw.dtype),
        grid_spec=pltpu.PrefetchScalarGridSpec(
            num_scalar_prefetch=0,
            grid=(n,),
            in_specs=[
                pl.BlockSpec((pl.Squeezed(), k_tot, hwq), lambda b: (b, 0, 0)),
                pl.BlockSpec((s2 * c_out, k_tot), lambda b: (0, 0)),
                pl.BlockSpec((s2 * c_out, 1), lambda b: (0, 0)),
                pl.BlockSpec((s2 * c_out, 1), lambda b: (0, 0)),
            ],
            out_specs=pl.BlockSpec((pl.Squeezed(), s2 * c_out, hwq),
                                   lambda b: (b, 0, 0)),
        ),
        compiler_params=pltpu.CompilerParams(dimension_semantics=("parallel",)),
    )(patches, w_all, scale_all, shift_all)

    # De-interleave sub-pixel phases: (N, s, s, C_out, Hq, Wq) -> NCHW.
    out = out.reshape(n, s, s, c_out, hq, wq)
    out = jnp.transpose(out, (0, 3, 4, 1, 5, 2))
    return out.reshape(n, c_out, h_out, w_out)


def _reference(x_nchw, wt, gamma, beta, run_mean, run_var,
               *, stride, padding, eps=1e-5, neg_slope=0.1):
    """Independent pure-JAX reference (lax conv) of the same eval-mode forward."""
    c_in, c_out, kh, kw = wt.shape
    w_fwd = jnp.transpose(wt[:, :, ::-1, ::-1], (1, 0, 2, 3))     # (C_out, C_in, kh, kw)
    y = lax.conv_general_dilated(
        x_nchw, w_fwd,
        window_strides=(1, 1),
        padding=[(kh - 1 - padding, kh - 1 - padding),
                 (kw - 1 - padding, kw - 1 - padding)],
        lhs_dilation=(stride, stride),
        dimension_numbers=('NCHW', 'OIHW', 'NCHW'))
    y = jnp.where(y > 0, y, neg_slope * y)
    scale = gamma / jnp.sqrt(run_var + eps)
    shift = beta - run_mean * scale
    return y * scale[None, :, None, None] + shift[None, :, None, None]


if __name__ == "__main__":
    # DecoderBlock(filter_in=4, filter_out=8, kernel=4, stride=2, padding=1)
    N, C_IN, H, W = 2, 4, 16, 16
    C_OUT, K, STRIDE, PAD = 8, 4, 2, 1

    key = jax.random.PRNGKey(0)
    kx, kw_, kg, kb, km, kv = jax.random.split(key, 6)

    x = jax.random.normal(kx, (N, C_IN, H, W), jnp.float32)
    # ConvTranspose2d weight: (in_channels, out_channels, kH, kW), bias=False
    wt = jax.random.normal(kw_, (C_IN, C_OUT, K, K), jnp.float32) * 0.1
    # BatchNorm2d params + running stats (deterministic synthetic values)
    gamma = 1.0 + 0.1 * jax.random.normal(kg, (C_OUT,), jnp.float32)
    beta = 0.1 * jax.random.normal(kb, (C_OUT,), jnp.float32)
    run_mean = 0.05 * jax.random.normal(km, (C_OUT,), jnp.float32)
    run_var = 0.5 + jnp.abs(jax.random.normal(kv, (C_OUT,), jnp.float32))

    fwd = jax.jit(functools.partial(decoder_block_forward,
                                    stride=STRIDE, padding=PAD))
    out = fwd(x, wt, gamma, beta, run_mean, run_var)
    out = jax.block_until_ready(out)

    ref = _reference(x, wt, gamma, beta, run_mean, run_var,
                     stride=STRIDE, padding=PAD)
    assert out.shape == (N, C_OUT, (H - 1) * STRIDE - 2 * PAD + K,
                         (W - 1) * STRIDE - 2 * PAD + K)
    np.testing.assert_allclose(np.asarray(out), np.asarray(ref), rtol=1e-4, atol=1e-4)

    print("KERNEL_OK")
</pallas_src>

<mosaic_0001>
module attributes {stable_mosaic.version = 11 : i64} {
  func.func @_decoder_block_kernel(%arg0: i32, %arg1: memref<1x36x256xf32, #tpu.memory_space<vmem>>, %arg2: memref<32x36xf32, #tpu.memory_space<vmem>>, %arg3: memref<32x1xf32, #tpu.memory_space<vmem>>, %arg4: memref<32x1xf32, #tpu.memory_space<vmem>>, %arg5: memref<1x32x256xf32, #tpu.memory_space<vmem>>) attributes {dimension_semantics = [#tpu.dimension_semantics<parallel>], iteration_bounds = array<i64: 2>, scalar_prefetch = 0 : i64, scratch_operands = 0 : i64, tpu.core_type = #tpu.core_type<tc>, window_params = [{transform_indices = @transform_0, window_bounds = array<i64: 1, 36, 256>}, {pipeline_mode = #tpu.pipeline_mode<synchronous>, transform_indices = @transform_1, window_bounds = array<i64: 32, 36>}, {pipeline_mode = #tpu.pipeline_mode<synchronous>, transform_indices = @transform_2, window_bounds = array<i64: 32, 1>}, {pipeline_mode = #tpu.pipeline_mode<synchronous>, transform_indices = @transform_3, window_bounds = array<i64: 32, 1>}, {transform_indices = @transform_4, window_bounds = array<i64: 1, 32, 256>}]} {
    %c0 = arith.constant 0 : index
    %c0_0 = arith.constant 0 : index
    %0 = vector.load %arg2[%c0, %c0_0] : memref<32x36xf32, #tpu.memory_space<vmem>>, vector<32x36xf32>
    %c0_1 = arith.constant 0 : index
    %c0_2 = arith.constant 0 : index
    %c0_3 = arith.constant 0 : index
    %1 = vector.load %arg1[%c0_1, %c0_2, %c0_3] : memref<1x36x256xf32, #tpu.memory_space<vmem>>, vector<1x36x256xf32>
    %2 = vector.shape_cast %1 : vector<1x36x256xf32> to vector<36x256xf32>
    %cst = arith.constant dense<0.000000e+00> : vector<32x256xf32>
    %3 = tpu.matmul %0, %2, %cst {dimension_numbers = #tpu.dot_dimension_numbers<[1], [0], [0], [1], [0, 0, 1, 1], [], []>} : vector<32x36xf32>, vector<36x256xf32>, vector<32x256xf32> -> vector<32x256xf32>
    %cst_4 = arith.constant 1.000000e-01 : f32
    %4 = vector.broadcast %cst_4 : f32 to vector<32x256xf32>
    %5 = arith.mulf %4, %3 : vector<32x256xf32>
    %6 = arith.maximumf %3, %5 : vector<32x256xf32>
    %c0_5 = arith.constant 0 : index
    %c0_6 = arith.constant 0 : index
    %7 = vector.load %arg3[%c0_5, %c0_6] : memref<32x1xf32, #tpu.memory_space<vmem>>, vector<32x1xf32>
    %8 = vector.broadcast %7 : vector<32x1xf32> to vector<32x256xf32>
    %9 = arith.mulf %6, %8 : vector<32x256xf32>
    %c0_7 = arith.constant 0 : index
    %c0_8 = arith.constant 0 : index
    %10 = vector.load %arg4[%c0_7, %c0_8] : memref<32x1xf32, #tpu.memory_space<vmem>>, vector<32x1xf32>
    %11 = vector.broadcast %10 : vector<32x1xf32> to vector<32x256xf32>
    %12 = arith.addf %9, %11 : vector<32x256xf32>
    %c0_9 = arith.constant 0 : index
    %c0_10 = arith.constant 0 : index
    %c0_11 = arith.constant 0 : index
    %13 = vector.load %arg5[%c0_9, %c0_10, %c0_11] : memref<1x32x256xf32, #tpu.memory_space<vmem>>, vector<1x32x256xf32>
    %14 = vector.shape_cast %13 : vector<1x32x256xf32> to vector<32x256xf32>
    %15 = vector.shape_cast %12 : vector<32x256xf32> to vector<1x32x256xf32>
    tpu.vector_store %arg5[%c0_9, %c0_10, %c0_11], %15 {strides = array<i32>} : memref<1x32x256xf32, #tpu.memory_space<vmem>>, vector<1x32x256xf32>,
    return
  }
  func.func @transform_0(%arg0: i32) -> (i32, i32, i32) {
    %c0_i32 = arith.constant 0 : i32
    %c0_i32_0 = arith.constant 0 : i32
    %c0_i32_1 = arith.constant 0 : i32
    return %arg0, %c0_i32, %c0_i32_0 : i32, i32, i32
  }
  func.func @transform_1(%arg0: i32) -> (i32, i32) {
    %c0_i32 = arith.constant 0 : i32
    %c0_i32_0 = arith.constant 0 : i32
    %c0_i32_1 = arith.constant 0 : i32
    return %c0_i32, %c0_i32_0 : i32, i32
  }
  func.func @transform_2(%arg0: i32) -> (i32, i32) {
    %c0_i32 = arith.constant 0 : i32
    %c0_i32_0 = arith.constant 0 : i32
    %c0_i32_1 = arith.constant 0 : i32
    return %c0_i32, %c0_i32_0 : i32, i32
  }
  func.func @transform_3(%arg0: i32) -> (i32, i32) {
    %c0_i32 = arith.constant 0 : i32
    %c0_i32_0 = arith.constant 0 : i32
    %c0_i32_1 = arith.constant 0 : i32
    return %c0_i32, %c0_i32_0 : i32, i32
  }
  func.func @transform_4(%arg0: i32) -> (i32, i32, i32) {
    %c0_i32 = arith.constant 0 : i32
    %c0_i32_0 = arith.constant 0 : i32
    %c0_i32_1 = arith.constant 0 : i32
    return %arg0, %c0_i32, %c0_i32_0 : i32, i32, i32
  }
}

</mosaic_0001>

<bundles_post_ra>
// kernel: tile.18
= control target key start
LH: loop header
LB: loop body
LE: loop exit
PB: predicated region body
PF: predicated region fallthrough
CT: control target
= control target key end

     0   :  { %s22_s0 = inlined_call_operand.vmem [shape: f32[8], index: 0, kind: input, shape index: {}]   ;;  %s23_s1 = inlined_call_operand.vmem [shape: f32[4,8], index: 1, kind: output, shape index: {}]  }
   0x1   :  { %v4_v0 = vld [vmem:[%s22_s0] ss:$0 sm:$0xff] }
   0x2   :  { %5 = vst [vmem:[%s23_s1] sm:$0xf] %v4_v0 }

// kernel: tile.0
= control target key start
LH: loop header
LB: loop body
LE: loop exit
PB: predicated region body
PF: predicated region fallthrough
CT: control target
= control target key end

     0   :  { %s66_s8 = smov 125   ;;  %vm7_vm0 = vcmask 7168   ;;  %s67_s11 = smov 126   ;;  %s117_s0 = inlined_call_operand.vmem [shape: f32[4,8], index: 0, kind: input, shape index: {}]   ;;  %s118_s1 = inlined_call_operand.vmem [shape: f32[32,1], index: 1, kind: output, shape index: {}]  }
   0x1   :  { %v4_v0 = vld [vmem:[%s117_s0] sm:$0xf]  ;;  %s65_s0 = smov 127   ;;  %s68_s12 = smov 124  }
   0x2   :  { %5 = vst [vmem:[#allocation0] sm:$0xf] %v4_v0  ;;  %s69_s13 = smov 123   ;;  %s70_s14 = smov 122  }
   0x3   :  { %s71_s15 = smov 121  }
   0x9   :  { %v9_v1 = vld [vmem:[#allocation0] sm:$0xf]  }
   0xa   :  { %v21_v2 = vld [vmem:[#allocation0] sm:$0xf]   ;;  %10 = vrot.lane.b32.xlu0 %v9_v1, %s65_s0 }
   0xb   :  { %22 = vrot.lane.b32.xlu1 %v21_v2, %s66_s8  ;;  %v15_v3 = vld [vmem:[#allocation0] sm:$0xf]  }
   0xc   :  { %v27_v4 = vld [vmem:[#allocation0] sm:$0xf]  }
   0xd   :  { %v6_v5 = vld [vmem:[#allocation0] sm:$0xf]  }
   0xe   :  { %8 = vst.msk [vmem:[%s118_s1] ss:$8 sm:$0xf] %vm7_vm0, %v6_v5   ;;  %16 = vrot.lane.b32.xlu0 %v15_v3, %s67_s11  ;;  %v33_v6 = vld [vmem:[#allocation0] sm:$0xf]  }
   0xf   :  { %28 = vrot.lane.b32.xlu1 %v27_v4, %s68_s12  ;;  %v39_v7 = vld [vmem:[#allocation0] sm:$0xf]  }
  0x10   :  { %v45_v8 = vld [vmem:[#allocation0] sm:$0xf]  }
  0x12   :  { %34 = vrot.lane.b32.xlu0 %v33_v6, %s69_s13 }
  0x13   :  { %40 = vrot.lane.b32.xlu1 %v39_v7, %s70_s14 }
  0x16   :  { %46 = vrot.lane.b32.xlu0 %v45_v8, %s71_s15 }
  0x7c   :  { %v11_v9 = vpop.permute.xlu0 %10  }
  0x7d   :  { %v23_v10 = vpop.permute.xlu1 %22   ;;  %51 = vst.msk [vmem:[%s118_s1 + $0x1] ss:$8 sm:$0xf] %vm7_vm0, %v11_v9  }
  0x7e   :  { %53 = vst.msk [vmem:[%s118_s1 + $0x3] ss:$8 sm:$0xf] %vm7_vm0, %v23_v10  }
  0x80   :  { %v17_v11 = vpop.permute.xlu0 %16  }
  0x81   :  { %v29_v12 = vpop.permute.xlu1 %28   ;;  %52 = vst.msk [vmem:[%s118_s1 + $0x2] ss:$8 sm:$0xf] %vm7_vm0, %v17_v11  }
  0x82   :  { %54 = vst.msk [vmem:[%s118_s1 + $0x4] ss:$8 sm:$0xf] %vm7_vm0, %v29_v12  }
  0x84   :  { %v35_v13 = vpop.permute.xlu0 %34  }
  0x85   :  { %v41_v14 = vpop.permute.xlu1 %40   ;;  %55 = vst.msk [vmem:[%s118_s1 + $0x5] ss:$8 sm:$0xf] %vm7_vm0, %v35_v13  }
  0x86   :  { %56 = vst.msk [vmem:[%s118_s1 + $0x6] ss:$8 sm:$0xf] %vm7_vm0, %v41_v14  }
  0x88   :  { %v47_v15 = vpop.permute.xlu0 %46  }
  0x89   :  { %57 = vst.msk [vmem:[%s118_s1 + $0x7] ss:$8 sm:$0xf] %vm7_vm0, %v47_v15  }

// kernel: decoder_block_forward.1
= control target key start
LH: loop header
LB: loop body
LE: loop exit
PB: predicated region body
PF: predicated region fallthrough
CT: control target
= control target key end

     0   :  { %s543_s15 = smov 0   ;;  %s616_s0 = inlined_call_operand.vmem [shape: f32[2,36,256], index: 0, kind: input, shape index: {}]   ;;  %s617_s1 = inlined_call_operand.vmem [shape: f32[32,36], index: 1, kind: input, shape index: {}]   ;;  %s618_s2 = inlined_call_operand.vmem [shape: f32[32,1], index: 2, kind: input, shape index: {}]   ;;  %s619_s3 = inlined_call_operand.vmem [shape: f32[32,1], index: 3, kind: input, shape index: {}]   ;;  %s620_s4 = inlined_call_operand.vmem [shape: f32[2,32,256], index: 4, kind: output, shape index: {}]  }
   0x1 LB: > { %s464_s16 = sadd.s32 4294967295, %s514_s15   ;;  %p468_p0 = scmp.ge.s32.totalorder %s514_s15, 1  ;;  %s514_s15 = sphi %s543_s15, %s14_s15  }
   0x2   : > { %p162_p1 = scmp.lt.s32.totalorder %s514_s15, 3 }
   0x4   : > { %p163_p2 = pnand %p468_p0, %p162_p1 }
   0x5   : > { %p188_p3 = scmp.lt.s32.totalorder (!%p163_p2), %s464_s16, 1  ;;  %v516_v0 = vmov (!%p163_p2), 0.0   ;;  %v339_v1 = vld [vmem:[%s618_s2 + $0x10] sm:$0xff] (!%p163_p2)  ;;  %v517_v2 = vmov (!%p163_p2), 0   ;;  %v337_v3 = vld [vmem:[%s618_s2] sm:$0xff] (!%p163_p2)  ;;  %v340_v4 = vld [vmem:[%s618_s2 + $0x18] sm:$0xff] (!%p163_p2) }
   0x6   : > { %166 = sbr.rel (%p163_p2) target bundleno = 256 (0x100), region = 36  ;;  %296 = vmatprep.mubr.f32.mxu0 (!%p163_p2), %v516_v0  ;;  %308 = vmatprep.mubr.f32.mxu1 (!%p163_p2), %v516_v0  ;;  %v338_v5 = vld [vmem:[%s618_s2 + $0x8] sm:$0xff] (!%p163_p2)  ;;  %v369_v18 = vld [vmem:[%s619_s3] sm:$0xff] (!%p163_p2)  ;;  %vm225_vm0 = vcmask (!%p163_p2), 1043456   ;;  %v372_v21 = vld [vmem:[%s619_s3 + $0x18] sm:$0xff] (!%p163_p2)  ;;  %vm212_vm1 = vcmask (!%p163_p2), 293888  }
   0x7   : > { %507 = vset.pattern.permute.xlu1 (!%p163_p2), %v517_v2  ;;  %506 = vset.pattern.permute.xlu0 (!%p163_p2), %v517_v2  ;;  %v370_v17 = vld [vmem:[%s619_s3 + $0x8] sm:$0xff] (!%p163_p2)  ;;  %v371_v22 = vld [vmem:[%s619_s3 + $0x10] sm:$0xff] (!%p163_p2)  ;;  %v198_v24 = vld [vmem:[%s617_s1] sm:$0xff] (!%p163_p2) }
   0x8   : > { %353 = vperm.xlu1 (!%p163_p2), %507, %v339_v1   ;;  %343 = vperm.xlu0 (!%p163_p2), %506, %v337_v3   ;;  %v200_v25 = vld [vmem:[%s617_s1 + $0x10] sm:$0xff] (!%p163_p2)  ;;  %v199_v26 = vld [vmem:[%s617_s1 + $0x8] sm:$0xff] (!%p163_p2)  ;;  %v201_v27 = vld [vmem:[%s617_s1 + $0x18] sm:$0xff] (!%p163_p2) }
   0xc   : > { %358 = vperm.xlu1 (!%p163_p2), %507, %v340_v4   ;;  %348 = vperm.xlu0 (!%p163_p2), %506, %v338_v5  }
   0xd   : > { %s622_s16 = smov (!%p188_p3, %s464_s16), 1 }
   0xe   : > { %s495_s21 = smul.u32 80, %s622_s16 }
  0x10   : > { %s569_s28 = scalar_lea.vmem %s616_s0, %s495_s21  ;;  %380 = vperm.xlu1 %507, %v370_v17   ;;  %375 = vperm.xlu0 %506, %v369_v18   ;;  %s480_s21 = sshll.u32 %s622_s16, 6 }
  0x11   : > { %v203_v6 = vld [vmem:[%s569_s28 + $0x8] sm:$0xff]  ;;  %v205_v7 = vld [vmem:[%s569_s28 + $0x18] sm:$0xff]  ;;  %v202_v8 = vld [vmem:[%s569_s28] sm:$0xff]  ;;  %s197_s24 = scalar_lea.vmem %s620_s4, %s480_s21 }
  0x12   : > { %v481_v9 = vpack.c.bf16 %v205_v7, %v203_v6  ;;  %v204_v10 = vld [vmem:[%s569_s28 + $0x10] sm:$0xff]  ;;  %v207_v11 = vld [vmem:[%s569_s28 + $0x28] sm:$0xff]  ;;  %v209_v12 = vld [vmem:[%s569_s28 + $0x38] sm:$0xff] }
  0x13   : > { %v483_v13 = vpack.c.bf16 %v204_v10, %v202_v8  ;;  %v485_v14 = vpack.c.bf16 %v209_v12, %v207_v11  ;;  %v206_v15 = vld [vmem:[%s569_s28 + $0x20] sm:$0xff]  ;;  %v208_v16 = vld [vmem:[%s569_s28 + $0x30] sm:$0xff]  ;;  %v211_v20 = vld [vmem:[%s569_s28 + $0x48] sm:$0xf] }
  0x14   : > { %482 = vmatprep.subr.bf16.mxu0 %v481_v9  ;;  %489 = vmatprep.subr.bf16.mxu1 %v481_v9  ;;  %v487_v19 = vpack.c.bf16 %v208_v16, %v206_v15  ;;  %v210_v23 = vld [vmem:[%s569_s28 + $0x40] sm:$0xf] }
  0x15   : > { %484 = vmatpush1.bf16.msra.mxu0 %v483_v13  ;;  %492 = vmatpush1.bf16.msra.mxu1 %v483_v13 }
  0x16   : > { %486 = vmatprep.subr.bf16.mxu0 %v485_v14  ;;  %490 = vmatprep.subr.bf16.mxu1 %v485_v14 }
  0x17   : > { %390 = vperm.xlu1 %507, %v372_v21   ;;  %385 = vperm.xlu0 %506, %v371_v22  }
  0x19   : > { %488 = vmatpush1.bf16.msra.mxu0 %v487_v19  ;;  %493 = vmatpush1.bf16.msra.mxu1 %v487_v19 }
  0x1a   : > { %472 = vmatprep.subr.msk.mxu0 %vm225_vm0, %v211_v20  ;;  %491 = vmatprep.subr.msk.mxu1 %vm225_vm0, %v211_v20 }
  0x1d   : > { %473 = vmatpush1.msk.msra.mxu0 %vm225_vm0, %v210_v23  ;;  %494 = vmatpush1.msk.msra.mxu1 %vm225_vm0, %v210_v23 }
  0x1e   : > { %474 = vmatmul.mubr.msk.f32.vlgmr.msra.gmra.mrb[0].mxu0 %vm212_vm1, %v198_v24  ;;  %476 = vmatmul.mubr.msk.f32.vlgmr.msra.gmra.mrb[0].mxu1 %vm212_vm1, %v200_v25 }
  0x1f   : > { %302 = vmatprep.mubr.f32.mxu0 %v516_v0  ;;  %314 = vmatprep.mubr.f32.mxu1 %v516_v0 }
  0x22   : > { %475 = vmatmul.mubr.msk.f32.gmra.mrb[2].mxu0 %vm212_vm1, %v199_v26  ;;  %477 = vmatmul.mubr.msk.f32.gmra.mrb[2].mxu1 %vm212_vm1, %v201_v27 }
  0x87   : > { %v344_v28 = vpop.permute.xlu0 %343  ;;  %v354_v29 = vpop.permute.xlu1 %353 }
  0x8b   : > { %v349_v30 = vpop.permute.xlu0 %348  ;;  %v359_v31 = vpop.permute.xlu1 %358 }
  0x8f   : > { %v376_v32 = vpop.permute.xlu0 %375  ;;  %v381_v41 = vpop.permute.xlu1 %380 }
  0x96   : > { %v386_v54 = vpop.permute.xlu0 %385  ;;  %v391_v5 = vpop.permute.xlu1 %390 }
  0xf1   : > { %v298_v33 = vpop.f32.mrb[0].mxu0  ;;  %v310_v34 = vpop.f32.mrb[0].mxu1 }
  0xf2   : > { %v321_v35 = vmul.f32 0.1, %v298_v33  ;;  %v325_v36 = vmul.f32 0.1, %v310_v34  ;;  %v300_v37 = vpop.f32.mrb[1].mxu0  ;;  %v312_v38 = vpop.f32.mrb[1].mxu1 }
  0xf3   : > { %v322_v39 = vmul.f32 0.1, %v300_v37  ;;  %v326_v40 = vmul.f32 0.1, %v312_v38 }
  0xf4   : > { %v329_v42 = vmax.f32 %v298_v33, %v321_v35  ;;  %v333_v43 = vmax.f32 %v310_v34, %v325_v36 }
  0xf5   : > { %v330_v44 = vmax.f32 %v300_v37, %v322_v39  ;;  %v334_v45 = vmax.f32 %v312_v38, %v326_v40  ;;  %v304_v46 = vpop.f32.mrb[2].mxu0  ;;  %v316_v47 = vpop.f32.mrb[2].mxu1 }
  0xf6   : > { %v361_v48 = vmul.f32 %v344_v28, %v329_v42  ;;  %v365_v49 = vmul.f32 %v354_v29, %v333_v43  ;;  %v323_v50 = vmul.f32 0.1, %v304_v46  ;;  %v327_v51 = vmul.f32 0.1, %v316_v47  ;;  %v306_v52 = vpop.f32.mrb[3].mxu0  ;;  %v318_v53 = vpop.f32.mrb[3].mxu1 }
  0xf7   : > { %v362_v55 = vmul.f32 %v344_v28, %v330_v44  ;;  %v366_v56 = vmul.f32 %v354_v29, %v334_v45  ;;  %v324_v57 = vmul.f32 0.1, %v306_v52  ;;  %v328_v58 = vmul.f32 0.1, %v318_v53 }
  0xf8   : > { %v393_v59 = vadd.f32 %v376_v32, %v361_v48  ;;  %v397_v60 = vadd.f32 %v386_v54, %v365_v49  ;;  %v331_v61 = vmax.f32 %v304_v46, %v323_v50  ;;  %v335_v62 = vmax.f32 %v316_v47, %v327_v51 }
  0xf9   : > { %v394_v63 = vadd.f32 %v376_v32, %v362_v55  ;;  %v398_v0 = vadd.f32 %v386_v54, %v366_v56  ;;  %v332_v1 = vmax.f32 %v306_v52, %v324_v57  ;;  %v336_v2 = vmax.f32 %v318_v53, %v328_v58 }
  0xfa   : > { %401 = vst [vmem:[%s197_s24] sm:$0xff] %v393_v59  ;;  %405 = vst [vmem:[%s197_s24 + $0x20] sm:$0xff] %v397_v60  ;;  %v363_v3 = vmul.f32 %v349_v30, %v331_v61  ;;  %v367_v4 = vmul.f32 %v359_v31, %v335_v62 }
  0xfb   : > { %402 = vst [vmem:[%s197_s24 + $0x8] sm:$0xff] %v394_v63  ;;  %406 = vst [vmem:[%s197_s24 + $0x28] sm:$0xff] %v398_v0  ;;  %v364_v6 = vmul.f32 %v349_v30, %v332_v1  ;;  %v368_v7 = vmul.f32 %v359_v31, %v336_v2 }
  0xfc   : > { %v395_v8 = vadd.f32 %v381_v41, %v363_v3  ;;  %v399_v9 = vadd.f32 %v391_v5, %v367_v4 }
  0xfd   : > { %v396_v10 = vadd.f32 %v381_v41, %v364_v6  ;;  %v400_v11 = vadd.f32 %v391_v5, %v368_v7 }
  0xfe   : > { %403 = vst [vmem:[%s197_s24 + $0x10] sm:$0xff] %v395_v8  ;;  %407 = vst [vmem:[%s197_s24 + $0x30] sm:$0xff] %v399_v9 }
  0xff   : > { %404 = vst [vmem:[%s197_s24 + $0x18] sm:$0xff] %v396_v10  ;;  %408 = vst [vmem:[%s197_s24 + $0x38] sm:$0xff] %v400_v11 }
 0x100 PF: > { %s14_s15 = sadd.s32 1, %s514_s15  }
 0x101   : > { %p11_p4 = scmp.ge.s32.totalorder %s14_s15, 4  }
 0x103   :  { %13 = sbr.rel (!%p11_p4) target bundleno = 1 (0x1), region = 66 }

</bundles_post_ra>
